<compile_context>
chip_gen: v6e
topology: v6e:2x2x1
jax: 0.10.0
libtpu: 0.0.40
codegen_flags: <defaults>
</compile_context>

<pallas_src>
import functools

import jax
import jax.numpy as jnp
from jax.experimental import pallas as pl
from jax.experimental.pallas import tpu as pltpu


_ROW_ALIGN = 16  # lcm of f32 (8) and bf16 (16) sublane tiling -> dtype-agnostic offsets


def _round_up(n, m):
    return ((n + m - 1) // m) * m


def _layout(state_dim, action_dim, fc1, fc2, fc3):
    """Static row/col offsets of each segment inside the packed weight buffer."""
    s_pad = _round_up(max(state_dim, 1), _ROW_ALIGN)
    fc1p = _round_up(fc1, 128)                      # fc1 padded to full lane tile
    fc2p = _round_up(fc2, 128)
    fc3p = _round_up(fc3, 128)
    av = 2 * fc3p                                   # fused A_fc1 | V_fc1 width
    head_pad = _round_up(action_dim + 1, 128)       # fused A_fc2 | V_fc2 width
    width = max(fc1p, fc2p, av, head_pad)
    off_w1 = 0
    off_w2 = off_w1 + s_pad
    off_wav1 = off_w2 + fc1p
    off_whead = off_wav1 + fc2p
    w_rows = off_whead + av
    return dict(s_pad=s_pad, fc1p=fc1p, fc2p=fc2p, fc3p=fc3p, av=av,
                head_pad=head_pad, width=width, off_w1=off_w1, off_w2=off_w2,
                off_wav1=off_wav1, off_whead=off_whead, w_rows=w_rows)


def pack_params(params, state_dim, action_dim, fc1_unit=64, fc2_unit=64,
                fc3_unit=128, dtype=jnp.float32):
    """Pack the 12 raw parameter tensors into (weights_buf, bias_buf).

    weights_buf: (w_rows, width) in `dtype` (f32, or bf16 for v6e/v7x MXU).
    bias_buf   : (8, width) float32 (biases always added in f32).
    """
    (w1, b1, w2, b2, wa1, ba1, wv1, bv1, wa2, ba2, wv2, bv2) = params
    fc1, fc2, fc3 = fc1_unit, fc2_unit, fc3_unit
    lay = _layout(state_dim, action_dim, fc1, fc2, fc3)
    fc3p, width = lay["fc3p"], lay["width"]

    wbuf = jnp.zeros((lay["w_rows"], width), jnp.float32)
    # fc1 / fc2 (zero-padded to 128 output lanes)
    wbuf = wbuf.at[lay["off_w1"]:lay["off_w1"] + state_dim, :fc1].set(w1)
    wbuf = wbuf.at[lay["off_w2"]:lay["off_w2"] + fc1, :fc2].set(w2)
    # Fused A_fc1 | V_fc1: A in cols [0, fc3), V in cols [fc3p, fc3p + fc3)
    wbuf = wbuf.at[lay["off_wav1"]:lay["off_wav1"] + fc2, :fc3].set(wa1)
    wbuf = wbuf.at[lay["off_wav1"]:lay["off_wav1"] + fc2, fc3p:fc3p + fc3].set(wv1)
    # Fused block-diagonal head: A rows -> cols [0, action_dim), V rows -> col action_dim
    wbuf = wbuf.at[lay["off_whead"]:lay["off_whead"] + fc3, :action_dim].set(wa2)
    wbuf = wbuf.at[lay["off_whead"] + fc3p:lay["off_whead"] + fc3p + fc3,
                   action_dim:action_dim + 1].set(wv2)
    wbuf = wbuf.astype(dtype)

    bbuf = jnp.zeros((8, width), jnp.float32)
    bbuf = bbuf.at[0, :fc1].set(b1[0])
    bbuf = bbuf.at[1, :fc2].set(b2[0])
    bbuf = bbuf.at[2, :fc3].set(ba1[0])
    bbuf = bbuf.at[2, fc3p:fc3p + fc3].set(bv1[0])
    bbuf = bbuf.at[3, :action_dim].set(ba2[0])
    bbuf = bbuf.at[3, action_dim:action_dim + 1].set(bv2[0])
    return wbuf, bbuf


def dqn_mlp_kernel(x_ref, w_ref, b_ref, head_ref, *,
                   s_pad, fc1p, fc2p, av, head_pad,
                   off_w1, off_w2, off_wav1, off_whead):
    """Fused dueling-DQN MLP for one batch tile -> lane-dense (TB, 128) head slab."""
    cdt = w_ref.dtype                                  # matmul-operand dtype (f32/bf16)
    x = x_ref[...]                                     # (TB, s_pad) f32

    # Biases stay f32 (element-wise path) — broadcast-add over the batch tile.
    # TODO(synk): switch to a stride-0 sublane-broadcast load (pl.ds(..., stride=0))
    # if the tiny XLU broadcast ever shows up in the bundle; it is noise here.
    b1 = b_ref[0:1, 0:fc1p]
    b2 = b_ref[1:2, 0:fc2p]
    b_av1 = b_ref[2:3, 0:av]
    b_head = b_ref[3:4, 0:head_pad]

    # fc1 + ReLU  (full 128-lane weight/bias tiles; padded lanes stay exactly 0)
    w1 = w_ref[off_w1:off_w1 + s_pad, 0:fc1p]
    h = jnp.dot(x.astype(cdt), w1, preferred_element_type=jnp.float32) + b1
    h = jnp.maximum(h, 0.0)

    # fc2 + ReLU
    w2 = w_ref[off_w2:off_w2 + fc1p, 0:fc2p]
    h = jnp.dot(h.astype(cdt), w2, preferred_element_type=jnp.float32) + b2
    h = jnp.maximum(h, 0.0)

    # Fused A_fc1 | V_fc1 + ReLU  (single 256-wide MXU pass)
    w_av1 = w_ref[off_wav1:off_wav1 + fc2p, 0:av]
    av_h = jnp.dot(h.astype(cdt), w_av1, preferred_element_type=jnp.float32) + b_av1
    av_h = jnp.maximum(av_h, 0.0)

    # Fused block-diagonal head: cols [0, action_dim) = A, col action_dim = V.
    w_head = w_ref[off_whead:off_whead + av, 0:head_pad]
    head = jnp.dot(av_h.astype(cdt), w_head, preferred_element_type=jnp.float32)
    head_ref[...] = head + b_head                      # unmasked lane-dense store


def dqn_forward(x, packed_w, packed_b, *, state_dim, action_dim,
                fc1_unit=64, fc2_unit=64, fc3_unit=128, batch_tile=256):
    """Dueling DQN forward: Q = V + (A - A.mean())  (global mean, as in the module)."""
    lay = _layout(state_dim, action_dim, fc1_unit, fc2_unit, fc3_unit)
    s_pad, width, head_pad = lay["s_pad"], lay["width"], lay["head_pad"]

    b_real = x.shape[0]
    batch_tile = max(8, _round_up(batch_tile, 8))
    tb = min(batch_tile, _round_up(b_real, 8))         # rows per grid step
    num_tiles = pl.cdiv(b_real, tb)
    b_pad = num_tiles * tb

    # Zero-pad batch rows / state features to the packed layout.
    # TODO(synk): for large training batches, feed x directly (no padded copy)
    # and mask only the ragged tail tile inside the kernel.
    x_p = jnp.zeros((b_pad, s_pad), jnp.float32)
    x_p = x_p.at[:b_real, :state_dim].set(x.astype(jnp.float32))

    kernel = functools.partial(
        dqn_mlp_kernel,
        s_pad=s_pad, fc1p=lay["fc1p"], fc2p=lay["fc2p"],
        av=lay["av"], head_pad=head_pad,
        off_w1=lay["off_w1"], off_w2=lay["off_w2"],
        off_wav1=lay["off_wav1"], off_whead=lay["off_whead"])

    flops = 2 * b_pad * (s_pad * lay["fc1p"] + lay["fc1p"] * lay["fc2p"]
                         + lay["fc2p"] * lay["av"] + lay["av"] * head_pad)
    bytes_accessed = (b_pad * s_pad * 4
                      + int(packed_w.size) * packed_w.dtype.itemsize
                      + int(packed_b.size) * packed_b.dtype.itemsize
                      + b_pad * head_pad * 4)

    head = pl.pallas_call(
        kernel,
        out_shape=jax.ShapeDtypeStruct((b_pad, head_pad), jnp.float32),
        grid=(num_tiles,),
        in_specs=[
            pl.BlockSpec((tb, s_pad), lambda i: (i, 0)),             # x: batch-tiled
            pl.BlockSpec((lay["w_rows"], width), lambda i: (0, 0)),  # weights: resident
            pl.BlockSpec((8, width), lambda i: (0, 0)),              # biases: resident
        ],
        out_specs=pl.BlockSpec((tb, head_pad), lambda i: (i, 0)),    # lane-dense slab
        compiler_params=pltpu.CompilerParams(
            dimension_semantics=("parallel",)),        # v7x: shard tiles over both TCs
        cost_estimate=pl.CostEstimate(
            flops=int(flops), transcendentals=0,
            bytes_accessed=int(bytes_accessed)),
    )(x_p, packed_w, packed_b)

    # Dueling combine. The PyTorch module uses A.mean() = GLOBAL mean over batch
    # AND actions, which couples every batch tile of the parallel grid, so this
    # tiny scalar reduce + elementwise finalize runs here on the head slab
    # (padded rows / lanes are sliced away first, so they never affect the mean).
    a = head[:b_real, :action_dim]
    v = head[:b_real, action_dim:action_dim + 1]
    return v + (a - jnp.mean(a))


# ---------------------------------------------------------------------------
# Parameter construction + pure-JAX reference (mirrors the PyTorch module).
# ---------------------------------------------------------------------------

def init_linear(key, in_features, out_features):
    """PyTorch nn.Linear default init: U(-1/sqrt(in), 1/sqrt(in)).
    Returns W already transposed to (in, out) and bias as (1, out)."""
    kw, kb = jax.random.split(key)
    bound = 1.0 / jnp.sqrt(jnp.float32(in_features))
    w = jax.random.uniform(kw, (in_features, out_features), jnp.float32, -bound, bound)
    b = jax.random.uniform(kb, (1, out_features), jnp.float32, -bound, bound)
    return w, b


def make_params(key, state_dim, action_dim, fc1_unit=64, fc2_unit=64, fc3_unit=128):
    keys = jax.random.split(key, 6)
    w1, b1 = init_linear(keys[0], state_dim, fc1_unit)     # fc1
    w2, b2 = init_linear(keys[1], fc1_unit, fc2_unit)      # fc2
    wa1, ba1 = init_linear(keys[2], fc2_unit, fc3_unit)    # A_fc1
    wv1, bv1 = init_linear(keys[3], fc2_unit, fc3_unit)    # V_fc1
    wa2, ba2 = init_linear(keys[4], fc3_unit, action_dim)  # A_fc2
    wv2, bv2 = init_linear(keys[5], fc3_unit, 1)           # V_fc2
    return (w1, b1, w2, b2, wa1, ba1, wv1, bv1, wa2, ba2, wv2, bv2)


def dqn_reference(x, params):
    """Pure-JAX reference mirroring the PyTorch forward (global A.mean())."""
    (w1, b1, w2, b2, wa1, ba1, wv1, bv1, wa2, ba2, wv2, bv2) = params
    h = jax.nn.relu(x @ w1 + b1)
    h = jax.nn.relu(h @ w2 + b2)
    a = jax.nn.relu(h @ wa1 + ba1)
    v = jax.nn.relu(h @ wv1 + bv1)
    a = a @ wa2 + ba2
    v = v @ wv2 + bv2
    return v + (a - jnp.mean(a))


if __name__ == "__main__":
    key = jax.random.PRNGKey(0)
    k_params, k_x = jax.random.split(key)

    batch = 2
    state_dim = 16
    action_dim = 8

    params = make_params(k_params, state_dim, action_dim)
    x = jax.random.normal(k_x, (batch, state_dim), jnp.float32)
    q_ref = dqn_reference(x, params)

    # f32 weights (works on all TPU generations).
    w32, b32 = pack_params(params, state_dim, action_dim, dtype=jnp.float32)
    q = dqn_forward(x, w32, b32, state_dim=state_dim, action_dim=action_dim)
    q = jax.block_until_ready(q)
    assert q.shape == (batch, action_dim)
    assert jnp.allclose(q, q_ref, atol=1e-4, rtol=1e-4), (q, q_ref)

    # Multi-tile "parallel" grid path (ragged batch spread over 3 grid steps).
    batch2 = 37
    x2 = jax.random.normal(jax.random.PRNGKey(1), (batch2, state_dim), jnp.float32)
    q2 = dqn_forward(x2, w32, b32, state_dim=state_dim, action_dim=action_dim,
                     batch_tile=16)
    q2 = jax.block_until_ready(q2)
    q2_ref = dqn_reference(x2, params)
    assert q2.shape == (batch2, action_dim)
    assert jnp.allclose(q2, q2_ref, atol=1e-4, rtol=1e-4)

    # bf16 matmul operands (v6e/v7x MXU fast path), f32 accumulation + f32 biases.
    wbf, bbf = pack_params(params, state_dim, action_dim, dtype=jnp.bfloat16)
    qbf = dqn_forward(x, wbf, bbf, state_dim=state_dim, action_dim=action_dim)
    qbf = jax.block_until_ready(qbf)
    assert qbf.shape == (batch, action_dim)
    assert jnp.allclose(qbf, q_ref, atol=5e-2, rtol=5e-2), (qbf, q_ref)

    print("KERNEL_OK")
</pallas_src>

<mosaic_0001>
module attributes {stable_mosaic.version = 11 : i64} {
  func.func @dqn_mlp_kernel(%arg0: i32, %arg1: memref<8x16xf32, #tpu.memory_space<vmem>>, %arg2: memref<528x256xf32, #tpu.memory_space<vmem>>, %arg3: memref<8x256xf32, #tpu.memory_space<vmem>>, %arg4: memref<8x128xf32, #tpu.memory_space<vmem>>) attributes {dimension_semantics = [#tpu.dimension_semantics<parallel>], iteration_bounds = array<i64: 1>, scalar_prefetch = 0 : i64, scratch_operands = 0 : i64, tpu.core_type = #tpu.core_type<tc>, window_params = [{transform_indices = @transform_0, window_bounds = array<i64: 8, 16>}, {pipeline_mode = #tpu.pipeline_mode<synchronous>, transform_indices = @transform_1, window_bounds = array<i64: 528, 256>}, {pipeline_mode = #tpu.pipeline_mode<synchronous>, transform_indices = @transform_2, window_bounds = array<i64: 8, 256>}, {transform_indices = @transform_3, window_bounds = array<i64: 8, 128>}]} {
    %c0 = arith.constant 0 : index
    %c0_0 = arith.constant 0 : index
    %0 = vector.load %arg1[%c0, %c0_0] : memref<8x16xf32, #tpu.memory_space<vmem>>, vector<8x16xf32>
    %c0_1 = arith.constant 0 : index
    %c0_2 = arith.constant 0 : index
    %1 = vector.load %arg3[%c0_1, %c0_2] : memref<8x256xf32, #tpu.memory_space<vmem>>, vector<1x128xf32>
    %c1 = arith.constant 1 : index
    %c0_3 = arith.constant 0 : index
    %2 = vector.load %arg3[%c1, %c0_3] : memref<8x256xf32, #tpu.memory_space<vmem>>, vector<1x128xf32>
    %c2 = arith.constant 2 : index
    %c0_4 = arith.constant 0 : index
    %3 = vector.load %arg3[%c2, %c0_4] : memref<8x256xf32, #tpu.memory_space<vmem>>, vector<1x256xf32>
    %c3 = arith.constant 3 : index
    %c0_5 = arith.constant 0 : index
    %4 = vector.load %arg3[%c3, %c0_5] : memref<8x256xf32, #tpu.memory_space<vmem>>, vector<1x128xf32>
    %c0_6 = arith.constant 0 : index
    %c0_7 = arith.constant 0 : index
    %5 = vector.load %arg2[%c0_6, %c0_7] : memref<528x256xf32, #tpu.memory_space<vmem>>, vector<16x128xf32>
    %cst = arith.constant dense<0.000000e+00> : vector<8x128xf32>
    %6 = tpu.matmul %0, %5, %cst {dimension_numbers = #tpu.dot_dimension_numbers<[1], [0], [0], [1], [0, 0, 1, 1], [], []>} : vector<8x16xf32>, vector<16x128xf32>, vector<8x128xf32> -> vector<8x128xf32>
    %7 = vector.broadcast %1 : vector<1x128xf32> to vector<8x128xf32>
    %8 = arith.addf %6, %7 : vector<8x128xf32>
    %cst_8 = arith.constant 0.000000e+00 : f32
    %9 = vector.broadcast %cst_8 : f32 to vector<8x128xf32>
    %10 = arith.maximumf %8, %9 : vector<8x128xf32>
    %c16 = arith.constant 16 : index
    %c0_9 = arith.constant 0 : index
    %11 = vector.load %arg2[%c16, %c0_9] : memref<528x256xf32, #tpu.memory_space<vmem>>, vector<128x128xf32>
    %cst_10 = arith.constant dense<0.000000e+00> : vector<8x128xf32>
    %12 = tpu.matmul %10, %11, %cst_10 {dimension_numbers = #tpu.dot_dimension_numbers<[1], [0], [0], [1], [0, 0, 1, 1], [], []>} : vector<8x128xf32>, vector<128x128xf32>, vector<8x128xf32> -> vector<8x128xf32>
    %13 = vector.broadcast %2 : vector<1x128xf32> to vector<8x128xf32>
    %14 = arith.addf %12, %13 : vector<8x128xf32>
    %cst_11 = arith.constant 0.000000e+00 : f32
    %15 = vector.broadcast %cst_11 : f32 to vector<8x128xf32>
    %16 = arith.maximumf %14, %15 : vector<8x128xf32>
    %c144 = arith.constant 144 : index
    %c0_12 = arith.constant 0 : index
    %17 = vector.load %arg2[%c144, %c0_12] : memref<528x256xf32, #tpu.memory_space<vmem>>, vector<128x256xf32>
    %cst_13 = arith.constant dense<0.000000e+00> : vector<8x256xf32>
    %18 = tpu.matmul %16, %17, %cst_13 {dimension_numbers = #tpu.dot_dimension_numbers<[1], [0], [0], [1], [0, 0, 1, 1], [], []>} : vector<8x128xf32>, vector<128x256xf32>, vector<8x256xf32> -> vector<8x256xf32>
    %19 = vector.broadcast %3 : vector<1x256xf32> to vector<8x256xf32>
    %20 = arith.addf %18, %19 : vector<8x256xf32>
    %cst_14 = arith.constant 0.000000e+00 : f32
    %21 = vector.broadcast %cst_14 : f32 to vector<8x256xf32>
    %22 = arith.maximumf %20, %21 : vector<8x256xf32>
    %c272 = arith.constant 272 : index
    %c0_15 = arith.constant 0 : index
    %23 = vector.load %arg2[%c272, %c0_15] : memref<528x256xf32, #tpu.memory_space<vmem>>, vector<256x128xf32>
    %cst_16 = arith.constant dense<0.000000e+00> : vector<8x128xf32>
    %24 = tpu.matmul %22, %23, %cst_16 {dimension_numbers = #tpu.dot_dimension_numbers<[1], [0], [0], [1], [0, 0, 1, 1], [], []>} : vector<8x256xf32>, vector<256x128xf32>, vector<8x128xf32> -> vector<8x128xf32>
    %25 = vector.broadcast %4 : vector<1x128xf32> to vector<8x128xf32>
    %26 = arith.addf %24, %25 : vector<8x128xf32>
    %c0_17 = arith.constant 0 : index
    %c0_18 = arith.constant 0 : index
    %27 = vector.load %arg4[%c0_17, %c0_18] : memref<8x128xf32, #tpu.memory_space<vmem>>, vector<8x128xf32>
    tpu.vector_store %arg4[%c0_17, %c0_18], %26 {strides = array<i32>} : memref<8x128xf32, #tpu.memory_space<vmem>>, vector<8x128xf32>,
    return
  }
  func.func @transform_0(%arg0: i32) -> (i32, i32) {
    %c0_i32 = arith.constant 0 : i32
    %c0_i32_0 = arith.constant 0 : i32
    return %arg0, %c0_i32 : i32, i32
  }
  func.func @transform_1(%arg0: i32) -> (i32, i32) {
    %c0_i32 = arith.constant 0 : i32
    %c0_i32_0 = arith.constant 0 : i32
    %c0_i32_1 = arith.constant 0 : i32
    return %c0_i32, %c0_i32_0 : i32, i32
  }
  func.func @transform_2(%arg0: i32) -> (i32, i32) {
    %c0_i32 = arith.constant 0 : i32
    %c0_i32_0 = arith.constant 0 : i32
    %c0_i32_1 = arith.constant 0 : i32
    return %c0_i32, %c0_i32_0 : i32, i32
  }
  func.func @transform_3(%arg0: i32) -> (i32, i32) {
    %c0_i32 = arith.constant 0 : i32
    %c0_i32_0 = arith.constant 0 : i32
    return %arg0, %c0_i32 : i32, i32
  }
}

</mosaic_0001>

<bundles_post_ra>
// kernel: tpu_custom_call.1
= control target key start
LH: loop header
LB: loop body
LE: loop exit
PB: predicated region body
PF: predicated region fallthrough
CT: control target
= control target key end

     0   :  { %8 = vsyncpa [#allocation3], 0  ;;  %s689_s0 = inlined_call_operand.hbm [shape: f32[8,16], index: 0, kind: input, shape index: {}]   ;;  %s690_s1 = inlined_call_operand.hbm [shape: f32[528,256], index: 1, kind: input, shape index: {}]   ;;  %s691_s2 = inlined_call_operand.hbm [shape: f32[8,256], index: 2, kind: input, shape index: {}]   ;;  %s692_s3 = inlined_call_operand.hbm [shape: f32[8,128], index: 3, kind: output, shape index: {}]  }
   0x1   :  { %9 = vsyncpa [#allocation6], 0 }
   0x2   :  { %10 = vsyncpa [#allocation4], 0  ;;  %s649_s12 = smov [#allocation5]  }
   0x3   :  { %s26_s13 = sshll.u32 %s649_s12, 4  ;;  %s27_s13 = int_to_ptr.vmem [resolvable:$true] %s26_s13 }
   0x4   :  { %s571_s14 = scalar_lea.vmem %s27_s13, 16896  ;;  %p576_p1 = scmp.lt.s32.totalorder %s27_s13, %s27_s13 }
   0x5   :  { %p572_p0 = scmp.ne.s32.totalorder %s27_s13, %s571_s14  ;;  %p577_p2 = scmp.lt.s32.totalorder %s571_s14, %s571_s14 }
   0x7   :  { %p578_p3 = por %p577_p2, %p576_p1 }
   0x9   :  { %p579_p4 = pnand %p578_p3, %p572_p0 }
   0xb   :  { %582 = shalt.err (!%p579_p4)
}
   0xc   :  { %s650_s15 = smov 256   ;;  %s651_s16 = smov 16  }
   0xd   :  { %32 = dma.hbm_to_vmem [thread:$0]  %s690_s1, 16896, %s27_s13, [#allocation6], %s650_s15, %s650_s15, %s651_s16  }
   0xe   :  { %s652_s19 = smov [#allocation2]   ;;  %s653_s21 = smov [#allocation7]  }
   0xf   :  { %s17_s20 = sshll.u32 %s652_s19, 4  ;;  %s39_s22 = sshll.u32 %s653_s21, 4  ;;  %s18_s20 = int_to_ptr.vmem [resolvable:$true] %s17_s20  ;;  %s40_s22 = int_to_ptr.vmem [resolvable:$true] %s39_s22 }
  0x10   :  { %s591_s23 = scalar_lea.vmem %s18_s20, 128  ;;  %p596_p6 = scmp.lt.s32.totalorder %s18_s20, %s18_s20 }
  0x11   :  { %p592_p5 = scmp.ne.s32.totalorder %s18_s20, %s591_s23  ;;  %p597_p7 = scmp.lt.s32.totalorder %s591_s23, %s591_s23 }
  0x13   :  { %p598_p8 = por %p597_p7, %p596_p6 }
  0x15   :  { %p599_p9 = pnand %p598_p8, %p592_p5 }
  0x17   :  { %602 = shalt.err (!%p599_p9)
}
  0x18   :  { %20 = dma.hbm_to_vmem [thread:$0]  %s689_s0, 128, %s18_s20, [#allocation3]  }
  0x19   :  { %s611_s26 = scalar_lea.vmem %s40_s22, 256  ;;  %p616_p11 = scmp.lt.s32.totalorder %s40_s22, %s40_s22 }
  0x1a   :  { %p612_p10 = scmp.ne.s32.totalorder %s40_s22, %s611_s26  ;;  %p617_p12 = scmp.lt.s32.totalorder %s611_s26, %s611_s26 }
  0x1c   :  { %p618_p13 = por %p617_p12, %p616_p11 }
  0x1e   :  { %p619_p0 = pnand %p618_p13, %p612_p10 }
  0x20   :  { %622 = shalt.err (!%p619_p0)
}
  0x21   :  { %42 = dma.hbm_to_vmem [thread:$0]  %s691_s2, 256, %s40_s22, [#allocation6]  }
  0x22   :  { %643 = dma.done.wait [#allocation3], 128  }
  0x23   :  { %644 = vsyncadd [#allocation3], 4294967168 }
  0x24   :  { %645 = dma.done.wait [#allocation6], 17152  }
  0x25   :  { %646 = vsyncadd [#allocation6], 4294950144  ;;  %v654_v0 = vmov 0.0   ;;  %vm655_vm0 = vmmov 0   ;;  %v59_v1 = vld [vmem:[#allocation5 + $0x10] sm:$0xff]  ;;  %v58_v2 = vld [vmem:[#allocation5] sm:$0xff] }
  0x26   :  { %513 = vmatprep.subr.mxu0 %v654_v0  ;;  %517 = vmatprep.mubr.msk.f32.mxu0 %vm655_vm0, %v654_v0  ;;  %v52_v3 = vld [vmem:[#allocation2] sm:$0xff]  ;;  %vm60_vm1 = vcmask 130048   ;;  %v150_v4 = vld [vmem:[#allocation5 + $0x110] sm:$0xff]  ;;  %v149_v5 = vld [vmem:[#allocation5 + $0x100] sm:$0xff]  ;;  %s656_s0 = smov [#allocation8]  }
  0x27   :  { %520 = vmatprep.subr.mxu1 %v654_v0  ;;  %552 = vmatprep.mubr.msk.f32.mxu1 %vm655_vm0, %v654_v0  ;;  %v148_v6 = vld [vmem:[#allocation5 + $0xf0] sm:$0xff]  ;;  %v147_v7 = vld [vmem:[#allocation5 + $0xe0] sm:$0xff]  ;;  %v253_v20 = vld [vmem:[#allocation5 + $0x218] sm:$0xff]  ;;  %s447_s2 = sshll.u32 %s656_s0, 4  ;;  %s448_s2 = int_to_ptr.vmem [resolvable:$true] %s447_s2 }
  0x28   :  { %514 = vmatpush3.msra.mxu0 %v59_v1  ;;  %521 = vmatpush3.msra.mxu1 %v150_v4  ;;  %v146_v8 = vld [vmem:[#allocation5 + $0xd0] sm:$0xff]  ;;  %v145_v9 = vld [vmem:[#allocation5 + $0xc0] sm:$0xff]  ;;  %v251_v22 = vld [vmem:[#allocation5 + $0x208] sm:$0xff]  ;;  %s623_s28 = scalar_lea.vmem %s448_s2, 128  ;;  %p628_p2 = scmp.lt.s32.totalorder %s448_s2, %s448_s2 }
  0x29   :  { %515 = vmatprep.subr.mxu0 %v654_v0  ;;  %522 = vmatprep.subr.mxu1 %v654_v0  ;;  %v144_v10 = vld [vmem:[#allocation5 + $0xb0] sm:$0xff]  ;;  %v143_v11 = vld [vmem:[#allocation5 + $0xa0] sm:$0xff]  ;;  %v249_v24 = vld [vmem:[#allocation5 + $0x1f8] sm:$0xff]  ;;  %p624_p1 = scmp.ne.s32.totalorder %s448_s2, %s623_s28  ;;  %p629_p3 = scmp.lt.s32.totalorder %s623_s28, %s623_s28 }
  0x2a   :  { %516 = vmatpush3.msra.mxu0 %v58_v2  ;;  %523 = vmatpush3.msra.mxu1 %v149_v5  ;;  %v142_v12 = vld [vmem:[#allocation5 + $0x90] sm:$0xff]  ;;  %v141_v13 = vld [vmem:[#allocation5 + $0x80] sm:$0xff]  ;;  %v247_v26 = vld [vmem:[#allocation5 + $0x1e8] sm:$0xff] }
  0x2b   :  { %518 = vmatmul.mubr.msk.f32.vlgmr.msra.gmra.mxu0 %vm60_vm1, %v52_v3  ;;  %524 = vmatprep.subr.mxu1 %v654_v0  ;;  %v140_v14 = vld [vmem:[#allocation5 + $0x70] sm:$0xff]  ;;  %v139_v15 = vld [vmem:[#allocation5 + $0x60] sm:$0xff]  ;;  %v245_v28 = vld [vmem:[#allocation5 + $0x1d8] sm:$0xff]  ;;  %p630_p4 = por %p629_p3, %p628_p2 }
  0x2c   :  { %329 = vmatprep.mubr.f32.mxu0 %v654_v0  ;;  %525 = vmatpush3.msra.mxu1 %v148_v6  ;;  %v138_v16 = vld [vmem:[#allocation5 + $0x50] sm:$0xff]  ;;  %v137_v17 = vld [vmem:[#allocation5 + $0x40] sm:$0xff]  ;;  %v243_v30 = vld [vmem:[#allocation5 + $0x1c8] sm:$0xff] }
  0x2d   :  { %526 = vmatprep.subr.mxu1 %v654_v0  ;;  %v136_v18 = vld [vmem:[#allocation5 + $0x30] sm:$0xff]  ;;  %v135_v19 = vld [vmem:[#allocation5 + $0x20] sm:$0xff]  ;;  %265 = vmatprep.subr.mxu0 %v253_v20  ;;  %v241_v32 = vld [vmem:[#allocation5 + $0x1b8] sm:$0xff]  ;;  %p631_p5 = pnand %p630_p4, %p624_p1 }
  0x2e   :  { %527 = vmatpush3.msra.mxu1 %v147_v7  ;;  %v252_v21 = vld [vmem:[#allocation5 + $0x210] sm:$0xff]  ;;  %v250_v23 = vld [vmem:[#allocation5 + $0x200] sm:$0xff]  ;;  %v239_v34 = vld [vmem:[#allocation5 + $0x1a8] sm:$0xff] }
  0x2f   :  { %528 = vmatprep.subr.mxu1 %v654_v0  ;;  %266 = vmatpush1.msra.mxu0 %v252_v21  ;;  %v248_v25 = vld [vmem:[#allocation5 + $0x1f0] sm:$0xff]  ;;  %v246_v27 = vld [vmem:[#allocation5 + $0x1e0] sm:$0xff]  ;;  %v237_v36 = vld [vmem:[#allocation5 + $0x198] sm:$0xff] }
  0x30   :  { %529 = vmatpush3.msra.mxu1 %v146_v8  ;;  %267 = vmatprep.subr.mxu0 %v251_v22  ;;  %v244_v29 = vld [vmem:[#allocation5 + $0x1d0] sm:$0xff]  ;;  %v242_v31 = vld [vmem:[#allocation5 + $0x1c0] sm:$0xff]  ;;  %v235_v38 = vld [vmem:[#allocation5 + $0x188] sm:$0xff] }
  0x31   :  { %530 = vmatprep.subr.mxu1 %v654_v0  ;;  %268 = vmatpush1.msra.mxu0 %v250_v23  ;;  %v240_v33 = vld [vmem:[#allocation5 + $0x1b0] sm:$0xff]  ;;  %v238_v35 = vld [vmem:[#allocation5 + $0x1a0] sm:$0xff]  ;;  %v233_v40 = vld [vmem:[#allocation5 + $0x178] sm:$0xff] }
  0x32   :  { %531 = vmatpush3.msra.mxu1 %v145_v9  ;;  %269 = vmatprep.subr.mxu0 %v249_v24  ;;  %v236_v37 = vld [vmem:[#allocation5 + $0x190] sm:$0xff]  ;;  %v234_v39 = vld [vmem:[#allocation5 + $0x180] sm:$0xff]  ;;  %v231_v42 = vld [vmem:[#allocation5 + $0x168] sm:$0xff] }
  0x33   :  { %532 = vmatprep.subr.mxu1 %v654_v0  ;;  %270 = vmatpush1.msra.mxu0 %v248_v25  ;;  %v232_v41 = vld [vmem:[#allocation5 + $0x170] sm:$0xff]  ;;  %v230_v43 = vld [vmem:[#allocation5 + $0x160] sm:$0xff]  ;;  %v229_v44 = vld [vmem:[#allocation5 + $0x158] sm:$0xff] }
  0x34   :  { %533 = vmatpush3.msra.mxu1 %v144_v10  ;;  %271 = vmatprep.subr.mxu0 %v247_v26  ;;  %v228_v45 = vld [vmem:[#allocation5 + $0x150] sm:$0xff]  ;;  %v227_v46 = vld [vmem:[#allocation5 + $0x148] sm:$0xff]  ;;  %v53_v47 = vld [vmem:[#allocation7] ss:$0 sm:$0xff] }
  0x35   :  { %534 = vmatprep.subr.mxu1 %v654_v0  ;;  %272 = vmatpush1.msra.mxu0 %v246_v27  ;;  %v226_v52 = vld [vmem:[#allocation5 + $0x140] sm:$0xff]  ;;  %v225_v53 = vld [vmem:[#allocation5 + $0x138] sm:$0xff]  ;;  %v224_v54 = vld [vmem:[#allocation5 + $0x130] sm:$0xff] }
  0x36   :  { %535 = vmatpush3.msra.mxu1 %v143_v11  ;;  %273 = vmatprep.subr.mxu0 %v245_v28  ;;  %v223_v55 = vld [vmem:[#allocation5 + $0x128] sm:$0xff]  ;;  %v222_v56 = vld [vmem:[#allocation5 + $0x120] sm:$0xff]  ;;  %v369_v57 = vld [vmem:[#allocation5 + $0x410] sm:$0xff] }
  0x37   :  { %536 = vmatprep.subr.mxu1 %v654_v0  ;;  %274 = vmatpush1.msra.mxu0 %v244_v29  ;;  %v353_v58 = vld [vmem:[#allocation5 + $0x310] sm:$0xff]  ;;  %v368_v59 = vld [vmem:[#allocation5 + $0x400] sm:$0xff] }
  0x38   :  { %537 = vmatpush3.msra.mxu1 %v142_v12  ;;  %275 = vmatprep.subr.mxu0 %v243_v30  ;;  %v352_v60 = vld [vmem:[#allocation5 + $0x300] sm:$0xff]  ;;  %v367_v61 = vld [vmem:[#allocation5 + $0x3f0] sm:$0xff]  ;;  %v255_v30 = vlaneseq }
  0x39   :  { %538 = vmatprep.subr.mxu1 %v654_v0  ;;  %276 = vmatpush1.msra.mxu0 %v242_v31  ;;  %v351_v62 = vld [vmem:[#allocation5 + $0x2f0] sm:$0xff]  ;;  %v366_v63 = vld [vmem:[#allocation5 + $0x3e0] sm:$0xff] }
  0x3a   :  { %539 = vmatpush3.msra.mxu1 %v141_v13  ;;  %277 = vmatprep.subr.mxu0 %v241_v32  ;;  %v365_v1 = vld [vmem:[#allocation5 + $0x3d0] sm:$0xff]  ;;  %v364_v3 = vld [vmem:[#allocation5 + $0x3c0] sm:$0xff]  ;;  %v256_v31 = vshrl.u32 %v255_v30, 7 }
  0x3b   :  { %540 = vmatprep.subr.mxu1 %v654_v0  ;;  %278 = vmatpush1.msra.mxu0 %v240_v33  ;;  %v349_v2 = vld [vmem:[#allocation5 + $0x2d0] sm:$0xff]  ;;  %v348_v4 = vld [vmem:[#allocation5 + $0x2c0] sm:$0xff] }
  0x3c   :  { %541 = vmatpush3.msra.mxu1 %v140_v14  ;;  %279 = vmatprep.subr.mxu0 %v239_v34  ;;  %v363_v5 = vld [vmem:[#allocation5 + $0x3b0] sm:$0xff]  ;;  %v362_v7 = vld [vmem:[#allocation5 + $0x3a0] sm:$0xff]  ;;  %v257_v32 = vsub.s32 0, %v256_v31  ;;  %v261_v34 = vsub.s32 1, %v256_v31 }
  0x3d   :  { %542 = vmatprep.subr.mxu1 %v654_v0  ;;  %280 = vmatpush1.msra.mxu0 %v238_v35  ;;  %v347_v6 = vld [vmem:[#allocation5 + $0x2b0] sm:$0xff]  ;;  %v346_v8 = vld [vmem:[#allocation5 + $0x2a0] sm:$0xff] }
  0x3e   :  { %543 = vmatpush3.msra.mxu1 %v139_v15  ;;  %281 = vmatprep.subr.mxu0 %v237_v36  ;;  %v361_v9 = vld [vmem:[#allocation5 + $0x390] sm:$0xff]  ;;  %v360_v11 = vld [vmem:[#allocation5 + $0x380] sm:$0xff] }
  0x3f   :  { %544 = vmatprep.subr.mxu1 %v654_v0  ;;  %282 = vmatpush1.msra.mxu0 %v236_v37  ;;  %v345_v10 = vld [vmem:[#allocation5 + $0x290] sm:$0xff]  ;;  %v344_v12 = vld [vmem:[#allocation5 + $0x280] sm:$0xff] }
  0x40   :  { %545 = vmatpush3.msra.mxu1 %v138_v16  ;;  %283 = vmatprep.subr.mxu0 %v235_v38  ;;  %v359_v13 = vld [vmem:[#allocation5 + $0x370] sm:$0xff]  ;;  %v358_v15 = vld [vmem:[#allocation5 + $0x360] sm:$0xff] }
  0x41   :  { %546 = vmatprep.subr.mxu1 %v654_v0  ;;  %284 = vmatpush1.msra.mxu0 %v234_v39  ;;  %v343_v14 = vld [vmem:[#allocation5 + $0x270] sm:$0xff]  ;;  %v342_v16 = vld [vmem:[#allocation5 + $0x260] sm:$0xff] }
  0x42   :  { %547 = vmatpush3.msra.mxu1 %v137_v17  ;;  %285 = vmatprep.subr.mxu0 %v233_v40  ;;  %v54_v17 = vld [vmem:[#allocation7 + $0x1] ss:$0 sm:$0xff]  ;;  %v357_v22 = vld [vmem:[#allocation5 + $0x350] sm:$0xff]  ;;  %v56_v33 = vld [vmem:[#allocation7 + $0x2] ss:$8 sm:$0x3] }
  0x43   :  { %548 = vmatprep.subr.mxu1 %v654_v0  ;;  %286 = vmatpush1.msra.mxu0 %v232_v41  ;;  %v341_v23 = vld [vmem:[#allocation5 + $0x250] sm:$0xff]  ;;  %v356_v24 = vld [vmem:[#allocation5 + $0x340] sm:$0xff]  ;;  %v258_v35 = vrot.slane %v56_v33, %v257_v32  ;;  %v262_v36 = vrot.slane %v56_v33, %v261_v34 }
  0x44   :  { %549 = vmatpush3.msra.mxu1 %v136_v18  ;;  %287 = vmatprep.subr.mxu0 %v231_v42  ;;  %v340_v25 = vld [vmem:[#allocation5 + $0x240] sm:$0xff]  ;;  %v355_v26 = vld [vmem:[#allocation5 + $0x330] sm:$0xff] }
  0x45   :  { %550 = vmatprep.subr.mxu1 %v654_v0  ;;  %288 = vmatpush1.msra.mxu0 %v230_v43  ;;  %v350_v0 = vld [vmem:[#allocation5 + $0x2e0] sm:$0xff]  ;;  %v339_v27 = vld [vmem:[#allocation5 + $0x230] sm:$0xff] }
  0x46   :  { %551 = vmatpush3.msra.mxu1 %v135_v19  ;;  %289 = vmatprep.subr.mxu0 %v229_v44  ;;  %v354_v28 = vld [vmem:[#allocation5 + $0x320] sm:$0xff] }
  0x47   :  { %290 = vmatpush1.msra.mxu0 %v228_v45  ;;  %478 = vmatprep.subr.mxu1 %v369_v57  ;;  %v338_v29 = vld [vmem:[#allocation5 + $0x220] sm:$0xff] }
  0x48   :  { %291 = vmatprep.subr.mxu0 %v227_v46  ;;  %v57_v44 = vld [vmem:[#allocation7 + $0x3] ss:$0 sm:$0xff] }
  0x49   :  { %292 = vmatpush1.msra.mxu0 %v226_v52 }
  0x4a   :  { %293 = vmatprep.subr.mxu0 %v225_v53 }
  0x4b   :  { %294 = vmatpush1.msra.mxu0 %v224_v54 }
  0x4c   :  { %295 = vmatprep.subr.mxu0 %v223_v55 }
  0x4d   :  { %296 = vmatpush1.msra.mxu0 %v222_v56 }
  0xeb   :  { %v130_v48 = vpop.f32.mrf.mxu0 }
  0xec   :  { %v131_v49 = vadd.f32 %v130_v48, %v53_v47 }
  0xed   :  { %v519_v50 = vpop.f32.mrf.mxu0 }
  0xee   :  { %v134_v51 = vmax.f32 %v131_v49, 0.0 }
  0xf0   :  { %553 = vmatmul.mubr.f32.vlgmr.msra.gmra.mxu1 %v134_v51 }
  0xf1   :  { %479 = vmatpush3.msra.mxu1 %v353_v58 }
  0xf2   :  { %480 = vmatprep.subr.mxu1 %v368_v59 }
  0xf3   :  { %481 = vmatpush3.msra.mxu1 %v352_v60 }
  0xf4   :  { %482 = vmatprep.subr.mxu1 %v367_v61 }
  0xf5   :  { %483 = vmatpush3.msra.mxu1 %v351_v62 }
  0xf6   :  { %484 = vmatprep.subr.mxu1 %v366_v63 }
  0xf7   :  { %485 = vmatpush3.msra.mxu1 %v350_v0 }
  0xf8   :  { %486 = vmatprep.subr.mxu1 %v365_v1 }
  0xf9   :  { %487 = vmatpush3.msra.mxu1 %v349_v2 }
  0xfa   :  { %488 = vmatprep.subr.mxu1 %v364_v3 }
  0xfb   :  { %489 = vmatpush3.msra.mxu1 %v348_v4 }
  0xfc   :  { %490 = vmatprep.subr.mxu1 %v363_v5 }
  0xfd   :  { %491 = vmatpush3.msra.mxu1 %v347_v6 }
  0xfe   :  { %492 = vmatprep.subr.mxu1 %v362_v7 }
  0xff   :  { %493 = vmatpush3.msra.mxu1 %v346_v8 }
 0x100   :  { %494 = vmatprep.subr.mxu1 %v361_v9 }
 0x101   :  { %495 = vmatpush3.msra.mxu1 %v345_v10 }
 0x102   :  { %496 = vmatprep.subr.mxu1 %v360_v11 }
 0x103   :  { %497 = vmatpush3.msra.mxu1 %v344_v12 }
 0x104   :  { %498 = vmatprep.subr.mxu1 %v359_v13 }
 0x105   :  { %499 = vmatpush3.msra.mxu1 %v343_v14 }
 0x106   :  { %500 = vmatprep.subr.mxu1 %v358_v15 }
 0x107   :  { %501 = vmatpush3.msra.mxu1 %v342_v16 }
 0x108   :  { %502 = vmatprep.subr.mxu1 %v357_v22 }
 0x109   :  { %503 = vmatpush3.msra.mxu1 %v341_v23 }
 0x10a   :  { %504 = vmatprep.subr.mxu1 %v356_v24 }
 0x10b   :  { %505 = vmatpush3.msra.mxu1 %v340_v25 }
 0x10c   :  { %506 = vmatprep.subr.mxu1 %v355_v26 }
 0x10d   :  { %507 = vmatpush3.msra.mxu1 %v339_v27 }
 0x10e   :  { %508 = vmatprep.subr.mxu1 %v354_v28 }
 0x10f   :  { %509 = vmatpush3.msra.mxu1 %v338_v29 }
 0x1b0   :  { %v217_v18 = vpop.f32.mrf.mxu1 }
 0x1b1   :  { %v218_v19 = vadd.f32 %v217_v18, %v54_v17 }
 0x1b2   :  { %v554_v20 = vpop.f32.mrf.mxu1 }
 0x1b3   :  { %v221_v21 = vmax.f32 %v218_v19, 0.0 }
 0x1b5   :  { %330 = vmatmul.mubr.f32.vlgmr.msra.gmra.mxu0 %v221_v21 }
 0x275   :  { %v331_v37 = vpop.f32.mrf.mxu0 }
 0x276   :  { %v332_v38 = vadd.f32 %v331_v37, %v258_v35 }
 0x277   :  { %v333_v39 = vpop.f32.mrf.mxu0 }
 0x278   :  { %v334_v40 = vadd.f32 %v333_v39, %v262_v36  ;;  %v336_v42 = vmax.f32 %v332_v38, 0.0 }
 0x27a   :  { %v337_v41 = vmax.f32 %v334_v40, 0.0 }
 0x27c   :  { %434 = vmatprep.mubr.f32.mxu1 %v337_v41 }
 0x27d   :  { %435 = vmatmul.mubr.f32.vlgmr.msra.gmra.mxu1 %v336_v42 }
 0x33d   :  { %v510_v43 = vpop.f32.mrf.mxu1 }
 0x33f   :  { %v511_v45 = vpop.f32.mrf.mxu1 }
 0x340   :  { %v512_v46 = vadd.f32 %v511_v45, %v510_v43 }
 0x342   :  { %v437_v47 = vadd.f32 %v512_v46, %v57_v44 }
 0x344   :  { %440 = vst [vmem:[#allocation8] sm:$0xff] %v437_v47 }
 0x345   :  { %634 = shalt.err (!%p631_p5)
}
 0x346   :  { %450 = dma.vmem_to_hbm [thread:$0]  %s448_s2, 128, %s692_s3, [#allocation4]  }
 0x347   :  { %647 = dma.done.wait [#allocation4], 128  }
 0x348   :  { %648 = vsyncadd [#allocation4], 4294967168 }
 0x349   :  { %454 = vsyncpa [#allocation3], 1 }
 0x34a   :  { %455 = vsyncpa [#allocation6], 1 }
 0x34b   :  { %456 = vsyncpa [#allocation4], 1 }

</bundles_post_ra>
